<compile_context>
chip_gen: v6e
topology: v6e:2x2x1
jax: 0.10.0
libtpu: 0.0.40
codegen_flags: <defaults>
</compile_context>

<pallas_src>
import jax
import jax.numpy as jnp
from jax.experimental import pallas as pl
from jax.experimental.pallas import tpu as pltpu


def mlp_kernel(x_ref, w1_ref, b1_ref, w2_ref, b2_ref, w3_ref, b3_ref, out_ref):
    x = x_ref[...]  # (TILE_B, D_in) float32

    # Linear(D_in -> H) + ReLU
    h1 = jnp.dot(x, w1_ref[...], preferred_element_type=jnp.float32) + b1_ref[...]
    h1 = jnp.maximum(h1, 0.0)

    # Linear(H -> H) + ReLU
    h2 = jnp.dot(h1, w2_ref[...], preferred_element_type=jnp.float32) + b2_ref[...]
    h2 = jnp.maximum(h2, 0.0)

    # Linear(H -> 1) + Sigmoid, computed lane-dense:
    #   (1, H) @ (H, TILE_B) -> (1, TILE_B)  (batch on lanes -> unmasked stores)
    logits = jnp.dot(w3_ref[...], h2.T, preferred_element_type=jnp.float32)
    logits = logits + b3_ref[0, 0]          # scalar bias from SMEM
    out_ref[0] = jax.nn.sigmoid(logits)     # out block is (1, 1, TILE_B)


def _round_up(x, m):
    return (x + m - 1) // m * m


def neuraln_forward(x, params, *, tile_b=1024):
    """x: (B, D_in); params: dict of W1,b1,W2,b2,W3,b3. Returns (B, 1) float32."""
    if x.dtype != jnp.float32:
        x = x.astype(jnp.float32)  # mirrors x.float() in NeuralN.forward
    B, d_in = x.shape

    # Tile the batch; keep TILE_B a multiple of 8 (f32 sublane tiling).
    tile_b = _round_up(min(tile_b, _round_up(B, 8)), 8)
    b_pad = _round_up(B, tile_b)
    if b_pad != B:
        x = jnp.pad(x, ((0, b_pad - B), (0, 0)))
    n_tiles = b_pad // tile_b

    w1, b1 = params["W1"], params["b1"]
    w2, b2 = params["W2"], params["b2"]
    w3_row = params["W3"].T                 # (1, H): last layer done lane-dense
    b3 = params["b3"].reshape(1, 1)         # scalar, lives in SMEM

    out = pl.pallas_call(
        mlp_kernel,
        out_shape=jax.ShapeDtypeStruct((n_tiles, 1, tile_b), jnp.float32),
        grid=(n_tiles,),
        in_specs=[
            pl.BlockSpec((tile_b, d_in), lambda i: (i, 0)),           # x tile
            pl.BlockSpec(w1.shape, lambda i: (0, 0)),                 # W1 (resident)
            pl.BlockSpec(b1.shape, lambda i: (0, 0)),                 # b1
            pl.BlockSpec(w2.shape, lambda i: (0, 0)),                 # W2
            pl.BlockSpec(b2.shape, lambda i: (0, 0)),                 # b2
            pl.BlockSpec(w3_row.shape, lambda i: (0, 0)),             # W3 as (1, H)
            pl.BlockSpec(memory_space=pltpu.MemorySpace.SMEM),        # b3 scalar
        ],
        out_specs=pl.BlockSpec((1, 1, tile_b), lambda i: (i, 0, 0)),  # lane-dense out
        compiler_params=pltpu.CompilerParams(
            dimension_semantics=("parallel",),
        ),
    )(x, w1, b1, w2, b2, w3_row, b3)

    # (n_tiles, 1, tile_b) -> (B, 1), dropping batch padding.
    return out.reshape(b_pad, 1)[:B]


def reference_forward(x, params):
    """Pure-jnp reference of the NeuralN forward (for correctness checking)."""
    x = x.astype(jnp.float32)
    h = jnp.maximum(x @ params["W1"] + params["b1"], 0.0)
    h = jnp.maximum(h @ params["W2"] + params["b2"], 0.0)
    return jax.nn.sigmoid(h @ params["W3"] + params["b3"])


def init_params(key, dims):
    """PyTorch-style Linear init: U(-1/sqrt(fan_in), 1/sqrt(fan_in)).

    Weights stored as (in_features, out_features); biases as (1, out_features).
    """
    params = {}
    for i in range(len(dims) - 1):
        fan_in, fan_out = dims[i], dims[i + 1]
        key, kw, kb = jax.random.split(key, 3)
        bound = 1.0 / jnp.sqrt(jnp.float32(fan_in))
        params[f"W{i + 1}"] = jax.random.uniform(
            kw, (fan_in, fan_out), jnp.float32, -bound, bound
        )
        params[f"b{i + 1}"] = jax.random.uniform(
            kb, (1, fan_out), jnp.float32, -bound, bound
        )
    return params


if __name__ == "__main__":
    key = jax.random.PRNGKey(0)

    input_dimension = 16
    hidden_dim = 32
    num_hidden_layers = 2
    output_dimension = 1
    batch = 8

    # layer sizes as built in NeuralN.__init__ with hidden_layers=None
    dims = [input_dimension] + [hidden_dim] * num_hidden_layers + [output_dimension]

    key, kx = jax.random.split(key)
    params = init_params(key, dims)
    x = jax.random.normal(kx, (batch, input_dimension), jnp.float32)

    # Small-batch run (single grid step).
    out = jax.block_until_ready(neuraln_forward(x, params))
    ref = reference_forward(x, params)
    assert out.shape == (batch, output_dimension)
    assert bool(jnp.allclose(out, ref, atol=1e-4, rtol=1e-4))

    # Larger, non-multiple batch: exercises the batch grid + padding path.
    key, kx2 = jax.random.split(key)
    x2 = jax.random.normal(kx2, (300, input_dimension), jnp.float32)
    out2 = jax.block_until_ready(neuraln_forward(x2, params, tile_b=128))
    ref2 = reference_forward(x2, params)
    assert out2.shape == (300, output_dimension)
    assert bool(jnp.allclose(out2, ref2, atol=1e-4, rtol=1e-4))

    # NOTE: at tiny B/feature sizes this whole forward is a few kFLOPs and plain
    # XLA fusion would beat any pallas_call fixed cost; the kernel pays off when
    # amortized over large batches via the batch grid above.
    print("KERNEL_OK")
</pallas_src>

<mosaic_0001>
module attributes {stable_mosaic.version = 11 : i64} {
  func.func @mlp_kernel(%arg0: i32, %arg1: memref<8x16xf32, #tpu.memory_space<vmem>>, %arg2: memref<16x32xf32, #tpu.memory_space<vmem>>, %arg3: memref<1x32xf32, #tpu.memory_space<vmem>>, %arg4: memref<32x32xf32, #tpu.memory_space<vmem>>, %arg5: memref<1x32xf32, #tpu.memory_space<vmem>>, %arg6: memref<1x32xf32, #tpu.memory_space<vmem>>, %arg7: memref<1x1xf32, #tpu.memory_space<smem>>, %arg8: memref<1x1x8xf32, #tpu.memory_space<vmem>>) attributes {dimension_semantics = [#tpu.dimension_semantics<parallel>], iteration_bounds = array<i64: 1>, scalar_prefetch = 0 : i64, scratch_operands = 0 : i64, tpu.core_type = #tpu.core_type<tc>, window_params = [{transform_indices = @transform_0, window_bounds = array<i64: 8, 16>}, {pipeline_mode = #tpu.pipeline_mode<synchronous>, transform_indices = @transform_1, window_bounds = array<i64: 16, 32>}, {pipeline_mode = #tpu.pipeline_mode<synchronous>, transform_indices = @transform_2, window_bounds = array<i64: 1, 32>}, {pipeline_mode = #tpu.pipeline_mode<synchronous>, transform_indices = @transform_3, window_bounds = array<i64: 32, 32>}, {pipeline_mode = #tpu.pipeline_mode<synchronous>, transform_indices = @transform_4, window_bounds = array<i64: 1, 32>}, {pipeline_mode = #tpu.pipeline_mode<synchronous>, transform_indices = @transform_5, window_bounds = array<i64: 1, 32>}, {transform_indices = @transform_6, window_bounds = array<i64: 1, 1>}, {transform_indices = @transform_7, window_bounds = array<i64: 1, 1, 8>}]} {
    %c0 = arith.constant 0 : index
    %c0_0 = arith.constant 0 : index
    %0 = vector.load %arg1[%c0, %c0_0] : memref<8x16xf32, #tpu.memory_space<vmem>>, vector<8x16xf32>
    %c0_1 = arith.constant 0 : index
    %c0_2 = arith.constant 0 : index
    %1 = vector.load %arg2[%c0_1, %c0_2] : memref<16x32xf32, #tpu.memory_space<vmem>>, vector<16x32xf32>
    %cst = arith.constant dense<0.000000e+00> : vector<8x32xf32>
    %2 = tpu.matmul %0, %1, %cst {dimension_numbers = #tpu.dot_dimension_numbers<[1], [0], [0], [1], [0, 0, 1, 1], [], []>} : vector<8x16xf32>, vector<16x32xf32>, vector<8x32xf32> -> vector<8x32xf32>
    %c0_3 = arith.constant 0 : index
    %c0_4 = arith.constant 0 : index
    %3 = vector.load %arg3[%c0_3, %c0_4] : memref<1x32xf32, #tpu.memory_space<vmem>>, vector<1x32xf32>
    %4 = vector.broadcast %3 : vector<1x32xf32> to vector<8x32xf32>
    %5 = arith.addf %2, %4 : vector<8x32xf32>
    %cst_5 = arith.constant 0.000000e+00 : f32
    %6 = vector.broadcast %cst_5 : f32 to vector<8x32xf32>
    %7 = arith.maximumf %5, %6 : vector<8x32xf32>
    %c0_6 = arith.constant 0 : index
    %c0_7 = arith.constant 0 : index
    %8 = vector.load %arg4[%c0_6, %c0_7] : memref<32x32xf32, #tpu.memory_space<vmem>>, vector<32x32xf32>
    %cst_8 = arith.constant dense<0.000000e+00> : vector<8x32xf32>
    %9 = tpu.matmul %7, %8, %cst_8 {dimension_numbers = #tpu.dot_dimension_numbers<[1], [0], [0], [1], [0, 0, 1, 1], [], []>} : vector<8x32xf32>, vector<32x32xf32>, vector<8x32xf32> -> vector<8x32xf32>
    %c0_9 = arith.constant 0 : index
    %c0_10 = arith.constant 0 : index
    %10 = vector.load %arg5[%c0_9, %c0_10] : memref<1x32xf32, #tpu.memory_space<vmem>>, vector<1x32xf32>
    %11 = vector.broadcast %10 : vector<1x32xf32> to vector<8x32xf32>
    %12 = arith.addf %9, %11 : vector<8x32xf32>
    %cst_11 = arith.constant 0.000000e+00 : f32
    %13 = vector.broadcast %cst_11 : f32 to vector<8x32xf32>
    %14 = arith.maximumf %12, %13 : vector<8x32xf32>
    %c0_12 = arith.constant 0 : index
    %c0_13 = arith.constant 0 : index
    %15 = vector.load %arg6[%c0_12, %c0_13] : memref<1x32xf32, #tpu.memory_space<vmem>>, vector<1x32xf32>
    %16 = tpu.transpose %14, [1, 0] : vector<8x32xf32> -> vector<32x8xf32>
    %cst_14 = arith.constant dense<0.000000e+00> : vector<1x8xf32>
    %17 = tpu.matmul %15, %16, %cst_14 {dimension_numbers = #tpu.dot_dimension_numbers<[1], [0], [0], [1], [0, 0, 1, 1], [], []>} : vector<1x32xf32>, vector<32x8xf32>, vector<1x8xf32> -> vector<1x8xf32>
    %c0_15 = arith.constant 0 : index
    %c0_16 = arith.constant 0 : index
    %18 = memref.load %arg7[%c0_15, %c0_16] : memref<1x1xf32, #tpu.memory_space<smem>>
    %19 = vector.broadcast %18 : f32 to vector<1x8xf32>
    %20 = arith.addf %17, %19 : vector<1x8xf32>
    %21 = arith.negf %20 : vector<1x8xf32>
    %22 = math.exp %21 : vector<1x8xf32>
    %cst_17 = arith.constant 1.000000e+00 : f32
    %23 = vector.broadcast %cst_17 : f32 to vector<1x8xf32>
    %24 = arith.addf %23, %22 : vector<1x8xf32>
    %25 = arith.divf %23, %24 : vector<1x8xf32>
    %c0_18 = arith.constant 0 : index
    %c0_19 = arith.constant 0 : index
    %c0_20 = arith.constant 0 : index
    %26 = vector.load %arg8[%c0_18, %c0_19, %c0_20] : memref<1x1x8xf32, #tpu.memory_space<vmem>>, vector<1x1x8xf32>
    %27 = vector.shape_cast %26 : vector<1x1x8xf32> to vector<1x8xf32>
    %28 = vector.shape_cast %25 : vector<1x8xf32> to vector<1x1x8xf32>
    tpu.vector_store %arg8[%c0_18, %c0_19, %c0_20], %28 {strides = array<i32>} : memref<1x1x8xf32, #tpu.memory_space<vmem>>, vector<1x1x8xf32>,
    return
  }
  func.func @transform_0(%arg0: i32) -> (i32, i32) {
    %c0_i32 = arith.constant 0 : i32
    %c0_i32_0 = arith.constant 0 : i32
    return %arg0, %c0_i32 : i32, i32
  }
  func.func @transform_1(%arg0: i32) -> (i32, i32) {
    %c0_i32 = arith.constant 0 : i32
    %c0_i32_0 = arith.constant 0 : i32
    %c0_i32_1 = arith.constant 0 : i32
    return %c0_i32, %c0_i32_0 : i32, i32
  }
  func.func @transform_2(%arg0: i32) -> (i32, i32) {
    %c0_i32 = arith.constant 0 : i32
    %c0_i32_0 = arith.constant 0 : i32
    %c0_i32_1 = arith.constant 0 : i32
    return %c0_i32, %c0_i32_0 : i32, i32
  }
  func.func @transform_3(%arg0: i32) -> (i32, i32) {
    %c0_i32 = arith.constant 0 : i32
    %c0_i32_0 = arith.constant 0 : i32
    %c0_i32_1 = arith.constant 0 : i32
    return %c0_i32, %c0_i32_0 : i32, i32
  }
  func.func @transform_4(%arg0: i32) -> (i32, i32) {
    %c0_i32 = arith.constant 0 : i32
    %c0_i32_0 = arith.constant 0 : i32
    %c0_i32_1 = arith.constant 0 : i32
    return %c0_i32, %c0_i32_0 : i32, i32
  }
  func.func @transform_5(%arg0: i32) -> (i32, i32) {
    %c0_i32 = arith.constant 0 : i32
    %c0_i32_0 = arith.constant 0 : i32
    %c0_i32_1 = arith.constant 0 : i32
    return %c0_i32, %c0_i32_0 : i32, i32
  }
  func.func @transform_6(%arg0: i32) -> (i32, i32) {
    %c0_i32 = arith.constant 0 : i32
    %c0_i32_0 = arith.constant 0 : i32
    %c0_i32_1 = arith.constant 0 : i32
    return %c0_i32, %c0_i32_0 : i32, i32
  }
  func.func @transform_7(%arg0: i32) -> (i32, i32, i32) {
    %c0_i32 = arith.constant 0 : i32
    %c0_i32_0 = arith.constant 0 : i32
    %c0_i32_1 = arith.constant 0 : i32
    return %arg0, %c0_i32, %c0_i32_0 : i32, i32, i32
  }
}

</mosaic_0001>

<bundles_post_ra>
// kernel: tpu_custom_call.1
= control target key start
LH: loop header
LB: loop body
LE: loop exit
PB: predicated region body
PF: predicated region fallthrough
CT: control target
= control target key end

     0   :  { %13 = vsyncpa [#allocation4], 0  ;;  %s554_s0 = inlined_call_operand.hbm [shape: f32[8,16], index: 0, kind: input, shape index: {}]   ;;  %s555_s1 = inlined_call_operand.hbm [shape: f32[16,32], index: 1, kind: input, shape index: {}]   ;;  %s556_s2 = inlined_call_operand.vmem [shape: f32[1,32], index: 2, kind: input, shape index: {}]   ;;  %s557_s3 = inlined_call_operand.hbm [shape: f32[32,32], index: 3, kind: input, shape index: {}]   ;;  %s558_s4 = inlined_call_operand.vmem [shape: f32[1,32], index: 4, kind: input, shape index: {}]   ;;  %s559_s5 = inlined_call_operand.vmem [shape: f32[1,32], index: 5, kind: input, shape index: {}]   ;;  %s560_s6 = inlined_call_operand.<no memory space> [shape: f32[1,1], index: 6, kind: input, shape index: {}]   ;;  %s561_s7 = inlined_call_operand.hbm [shape: f32[1,1,8], index: 7, kind: output, shape index: {}]  }
   0x1   :  { %14 = vsyncpa [#allocation7], 0 }
   0x2   :  { %15 = vsyncpa [#allocation5], 0  ;;  %s479_s24 = smov [#allocation6]  }
   0x3   :  { %s31_s25 = sshll.u32 %s479_s24, 4  ;;  %s32_s25 = int_to_ptr.vmem [resolvable:$true] %s31_s25 }
   0x4   :  { %s401_s26 = scalar_lea.vmem %s32_s25, 256  ;;  %p406_p1 = scmp.lt.s32.totalorder %s32_s25, %s32_s25 }
   0x5   :  { %p402_p0 = scmp.ne.s32.totalorder %s32_s25, %s401_s26  ;;  %p407_p2 = scmp.lt.s32.totalorder %s401_s26, %s401_s26 }
   0x7   :  { %p408_p3 = por %p407_p2, %p406_p1 }
   0x9   :  { %p409_p4 = pnand %p408_p3, %p402_p0 }
   0xb   :  { %412 = shalt.err (!%p409_p4)
}
   0xc   :  { %s480_s27 = smov 128   ;;  %s481_s28 = smov 8  }
   0xd   :  { %37 = dma.hbm_to_vmem [thread:$0]  %s555_s1, 256, %s32_s25, [#allocation7], %s480_s27, %s480_s27, %s481_s28  }
   0xe   :  { %s482_s8 = smov [#allocation3]   ;;  %s483_s10 = smov [#allocation8]  }
   0xf   :  { %s22_s9 = sshll.u32 %s482_s8, 4  ;;  %s45_s11 = sshll.u32 %s483_s10, 4  ;;  %s23_s9 = int_to_ptr.vmem [resolvable:$true] %s22_s9  ;;  %s46_s11 = int_to_ptr.vmem [resolvable:$true] %s45_s11 }
  0x10   :  { %s421_s12 = scalar_lea.vmem %s23_s9, 128  ;;  %p426_p6 = scmp.lt.s32.totalorder %s23_s9, %s23_s9 }
  0x11   :  { %p422_p5 = scmp.ne.s32.totalorder %s23_s9, %s421_s12  ;;  %p427_p7 = scmp.lt.s32.totalorder %s421_s12, %s421_s12 }
  0x13   :  { %p428_p8 = por %p427_p7, %p426_p6 }
  0x15   :  { %p429_p9 = pnand %p428_p8, %p422_p5 }
  0x17   :  { %432 = shalt.err (!%p429_p9)
}
  0x18   :  { %25 = dma.hbm_to_vmem [thread:$0]  %s554_s0, 128, %s23_s9, [#allocation4]  }
  0x19   :  { %s441_s15 = scalar_lea.vmem %s46_s11, 512  ;;  %p446_p11 = scmp.lt.s32.totalorder %s46_s11, %s46_s11 }
  0x1a   :  { %p442_p10 = scmp.ne.s32.totalorder %s46_s11, %s441_s15  ;;  %p447_p12 = scmp.lt.s32.totalorder %s441_s15, %s441_s15 }
  0x1c   :  { %p448_p13 = por %p447_p12, %p446_p11 }
  0x1e   :  { %p449_p0 = pnand %p448_p13, %p442_p10 }
  0x20   :  { %452 = shalt.err (!%p449_p0)
}
  0x21   :  { %51 = dma.hbm_to_vmem [thread:$0]  %s557_s3, 512, %s46_s11, [#allocation7], %s480_s27, %s480_s27, %s481_s28  }
  0x22   :  { %473 = dma.done.wait [#allocation4], 128  }
  0x23   :  { %474 = vsyncadd [#allocation4], 4294967168 }
  0x24   :  { %475 = dma.done.wait [#allocation7], 768  }
  0x25   :  { %476 = vsyncadd [#allocation7], 4294966528  ;;  %v484_v0 = vmov 0.0   ;;  %vm485_vm0 = vmmov 0   ;;  %v69_v1 = vld [vmem:[#allocation6 + $0x8] sm:$0xff]  ;;  %v68_v2 = vld [vmem:[#allocation6] sm:$0xff]  ;;  %v240_v19 = vstv %s560_s6 }
  0x26   :  { %358 = vmatprep.subr.mxu0 %v484_v0  ;;  %362 = vmatprep.mubr.msk.f32.mxu0 %vm485_vm0, %v484_v0  ;;  %v67_v3 = vld [vmem:[#allocation3] sm:$0xff]  ;;  %vm77_vm1 = vcmask 130048   ;;  %v155_v4 = vld [vmem:[#allocation8 + $0x18] sm:$0xff]  ;;  %v154_v5 = vld [vmem:[#allocation8 + $0x10] sm:$0xff]  ;;  %vm163_vm2 = vcmask 261120   ;;  %vm323_vm3 = vcmask 57344  }
  0x27   :  { %365 = vmatprep.subr.mxu1 %v484_v0  ;;  %373 = vmatprep.mubr.msk.f32.mxu1 %vm485_vm0, %v484_v0  ;;  %v153_v6 = vld [vmem:[#allocation8 + $0x8] sm:$0xff]  ;;  %v152_v7 = vld [vmem:[#allocation8] sm:$0xff] }
  0x28   :  { %359 = vmatpush3.msra.mxu0 %v69_v1  ;;  %366 = vmatpush3.msra.mxu1 %v155_v4  ;;  %v341_v8 = vld [vmem:[%s556_s2] ss:$0 sm:$0xff] }
  0x29   :  { %360 = vmatprep.subr.mxu0 %v484_v0  ;;  %367 = vmatprep.subr.mxu1 %v484_v0  ;;  %v343_v13 = vld [vmem:[%s558_s4] ss:$0 sm:$0xff]  ;;  %s486_s4 = smov [#allocation9]  }
  0x2a   :  { %361 = vmatpush3.msra.mxu0 %v68_v2  ;;  %368 = vmatpush3.msra.mxu1 %v154_v5  ;;  %v238_v18 = vld [vmem:[%s559_s5] sm:$0x1]  ;;  %s331_s22 = sshll.u32 %s486_s4, 4  ;;  %s332_s22 = int_to_ptr.vmem [resolvable:$true] %s331_s22 }
  0x2b   :  { %363 = vmatmul.mubr.msk.f32.vlgmr.msra.gmra.mxu0 %vm77_vm1, %v67_v3  ;;  %376 = vmatprep.subr.mxu0 %v484_v0  ;;  %s453_s5 = scalar_lea.vmem %s332_s22, 16  ;;  %s457_s23 = scalar_lea.vmem %s332_s22, 32 }
  0x2c   :  { %378 = vmatprep.mubr.msk.f32.mxu0 %vm485_vm0, %v484_v0  ;;  %369 = vmatprep.subr.mxu1 %v484_v0  ;;  %p454_p1 = scmp.ne.s32.totalorder %s332_s22, %s453_s5  ;;  %p458_p2 = scmp.lt.s32.totalorder %s332_s22, %s332_s22 }
  0x2d   :  { %370 = vmatpush3.msra.mxu1 %v153_v6  ;;  %p459_p3 = scmp.lt.s32.totalorder %s457_s23, %s453_s5 }
  0x2e   :  { %371 = vmatprep.subr.mxu1 %v484_v0 }
  0x2f   :  { %372 = vmatpush3.msra.mxu1 %v152_v7  ;;  %p460_p4 = por %p459_p3, %p458_p2 }
  0x31   :  { %p461_p5 = pnand %p460_p4, %p454_p1 }
  0xeb   :  { %v147_v9 = vpop.f32.mrf.mxu0 }
  0xec   :  { %v148_v10 = vadd.f32 %v341_v8, %v147_v9 }
  0xed   :  { %v364_v11 = vpop.f32.mrf.mxu0 }
  0xee   :  { %v151_v12 = vmax.f32 %v148_v10, 0.0 }
  0xf0   :  { %374 = vmatmul.mubr.msk.f32.vlgmr.msra.gmra.mxu1 %vm163_vm2, %v151_v12 }
 0x1b0   :  { %v233_v14 = vpop.f32.mrf.mxu1 }
 0x1b1   :  { %v234_v15 = vadd.f32 %v343_v13, %v233_v14 }
 0x1b2   :  { %v375_v16 = vpop.f32.mrf.mxu1 }
 0x1b3   :  { %v237_v17 = vmax.f32 %v234_v15, 0.0 }
 0x1b5   :  { %377 = vmatpush3.xpose.msk.msra.mxu0 %vm163_vm2, %v237_v17 }
 0x1b8   :  { %379 = vmatmul.mubr.msk.f32.vlgmr.msra.gmra.mxu0 %vm163_vm2, %v238_v18 }
 0x278   :  { %v313_v20 = vpop.f32.mrf.mxu0 }
 0x279   :  { %v314_v21 = vadd.f32 %v313_v20, %v240_v19 }
 0x27a   :  { %v380_v22 = vpop.f32.mrf.mxu0 }
 0x27b   :  { %v347_v23 = vmul.f32 -1.442695, %v314_v21 }
 0x27d   :  { %389 = vpow2.f32 %v347_v23 }
 0x28a   :  { %v390_v24 = vpop.eup %389 }
 0x28b   :  { %v320_v25 = vadd.f32 1.0, %v390_v24 }
 0x28d   :  { %391 = vrcp.f32 %v320_v25 }
 0x29a   :  { %v392_v26 = vpop.eup %391 }
 0x29b   :  { %324 = vst.msk [vmem:[#allocation9] sm:$0x1] %vm323_vm3, %v392_v26 }
 0x29c   :  { %464 = shalt.err (!%p461_p5)
}
 0x29d   :  { %334 = dma.vmem_to_hbm [thread:$0]  %s332_s22, 16, %s561_s7, [#allocation5]  }
 0x29e   :  { %477 = dma.done.wait [#allocation5], 16  }
 0x29f   :  { %478 = vsyncadd [#allocation5], 4294967280 }
 0x2a0   :  { %338 = vsyncpa [#allocation4], 1 }
 0x2a1   :  { %339 = vsyncpa [#allocation7], 1 }
 0x2a2   :  { %340 = vsyncpa [#allocation5], 1 }

</bundles_post_ra>
